<compile_context>
chip_gen: v7x
topology: tpu7x:2x2x1
jax: 0.10.0
libtpu: 0.0.40
codegen_flags: <defaults>
</compile_context>

<pallas_src>
import math

import jax
import jax.numpy as jnp
from jax.experimental import pallas as pl
from jax.experimental.pallas import tpu as pltpu


# ----------------------------- activations ---------------------------------

def _gelu_exact(x):
    # torch.nn.functional.gelu default: exact erf-based GELU (f32 math).
    return 0.5 * x * (1.0 + jax.lax.erf(x * (1.0 / math.sqrt(2.0))))


def _gelu_tanh(x):
    # tanh approximation: single EUP tanh (free bundle slot) instead of the
    # long erf VPU polynomial -- use on v6e/v7x when tolerance allows.
    c = math.sqrt(2.0 / math.pi)
    return 0.5 * x * (1.0 + jnp.tanh(c * (x + 0.044715 * x * x * x)))


def _mix_act(x):
    sig = (x >= 0.0).astype(x.dtype)
    t = 1.12643 * x - math.pi
    small = jnp.abs(t) < 1e-5
    t = jnp.where(small & (t >= 0.0), 1e-5, t)
    t = jnp.where(small & (t < 0.0), -1e-5, t)
    return sig * _gelu_exact(x) + (1.0 - sig) * (jnp.sin(t) / t)


def _apply_act(x, act, gelu_approx=False):
    if act == "gelu":
        return _gelu_tanh(x) if gelu_approx else _gelu_exact(x)
    if act == "relu":
        return jnp.maximum(x, 0.0)
    if act == "swish":
        return x * jax.nn.sigmoid(x)
    if act == "mix_act":
        return _mix_act(x)
    raise ValueError(f"unsupported activation: {act}")


# ------------------------------- kernel ------------------------------------

def make_transform_kernel(act: str, ln_eps: float, gelu_approx: bool):
    def kernel(x_ref, w_ref, vec_ref, o_ref):
        # Dense: x @ W^T (W pre-transposed at prep time). Cast x to the MXU
        # operand dtype (bf16 single-pass on the MXU); accumulate in f32.
        x = x_ref[...].astype(w_ref.dtype)
        y = jnp.dot(x, w_ref[...],
                    preferred_element_type=jnp.float32)          # [tile_n, H] f32

        bias = vec_ref[0:1, :].astype(jnp.float32)               # [1, H]
        gamma = vec_ref[1:2, :].astype(jnp.float32)
        beta = vec_ref[2:3, :].astype(jnp.float32)

        y = y + bias
        y = _apply_act(y, act, gelu_approx)

        # BertLayerNorm, one-pass f32 statistics: both cross-lane reductions
        # come straight from y (no serial mean -> subtract -> mean chain),
        # rsqrt on the EUP instead of a VPU divide.
        mean = jnp.mean(y, axis=-1, keepdims=True)
        msq = jnp.mean(y * y, axis=-1, keepdims=True)
        var = jnp.maximum(msq - mean * mean, 0.0)
        inv = jax.lax.rsqrt(var + ln_eps)
        o_ref[...] = ((y - mean) * (inv * gamma) + beta).astype(o_ref.dtype)

    return kernel


# ------------------------------ wrapper -------------------------------------

def _round_up(x, m):
    return (x + m - 1) // m * m


def _vmem_capacity_bytes():
    try:
        return int(pltpu.get_tpu_info().vmem_capacity_bytes)
    except Exception:
        return 64 << 20  # conservative: v7x per-TensorCore VMEM


def prepare_params(params, *, mxu_dtype=jnp.bfloat16):
    """One-time parameter prep (do this at load time, not per call).

    Transposes the torch-layout [H_out, H_in] weight to [H_in, H_out] and
    casts it to the MXU operand dtype; packs bias/gamma/beta into one [3, H]
    f32 slab so the kernel needs a single small resident DMA for them.
    """
    w_t = jnp.asarray(params["dense_w"]).T.astype(mxu_dtype)
    vecs = jnp.stack(
        [jnp.asarray(params["dense_b"]),
         jnp.asarray(params["ln_gamma"]),
         jnp.asarray(params["ln_beta"])], axis=0).astype(jnp.float32)
    return {"w_t": w_t, "vecs": vecs}


def bert_prediction_head_transform(hidden_states, prepared, *, act="gelu",
                                   ln_eps=1e-5, gelu_approx=False,
                                   tile_n=512):
    """Pallas implementation of BertPredictionHeadTransform.forward."""
    orig_shape = hidden_states.shape
    H = orig_shape[-1]
    x2d = hidden_states.reshape(-1, H)
    N = x2d.shape[0]

    w_t = prepared["w_t"]
    vecs = prepared["vecs"]

    itemsize = jnp.dtype(hidden_states.dtype).itemsize
    w_itemsize = jnp.dtype(w_t.dtype).itemsize
    # dtype-native sublane tile: 8 rows for f32, 16 for bf16, 32 for int8/fp8.
    sublane = {4: 8, 2: 16, 1: 32}.get(itemsize, 8)

    # Row tile: multiple of the native sublane tile, and capped so the grid
    # has >= 2 row blocks when N permits (lets "parallel" shard across the two
    # TensorCores on v7x even at small/medium N).
    tile_n = min(tile_n, _round_up(pl.cdiv(N, 2), sublane))
    tile_n = max(tile_n, sublane)

    # VMEM budget from the actual tiles.  Every BlockSpec input gets TWO
    # pipeline buffers by default -- including the "resident" weight and vec
    # slab -- so count both; add headroom for the f32 epilogue intermediates.
    def vmem_estimate(tn):
        x_b = tn * H * itemsize
        o_b = tn * H * itemsize
        w_b = H * H * w_itemsize
        v_b = 3 * H * 4
        f32_tmp = tn * H * 4
        return 2 * x_b + 2 * o_b + 2 * w_b + 2 * v_b + 3 * f32_tmp + (2 << 20)

    capacity = _vmem_capacity_bytes()
    budget = max(capacity - (8 << 20), 16 << 20)
    while vmem_estimate(tile_n) > budget and tile_n > sublane:
        tile_n = max(sublane, _round_up(tile_n // 2, sublane))
    # TODO(synk): if the resident weight alone exceeds the budget (very large H
    # on v7x's 64 MiB), a K-tiled accumulator grid is needed; not implemented.

    vmem_limit = int(min(max(vmem_estimate(tile_n), 16 << 20), budget))

    grid = (pl.cdiv(N, tile_n),)

    cost = pl.CostEstimate(
        flops=2 * N * H * H,
        transcendentals=N * H,
        bytes_accessed=int(2 * N * H * itemsize + H * H * w_itemsize + 3 * H * 4),
    )

    kernel = make_transform_kernel(act, ln_eps, gelu_approx)

    out2d = pl.pallas_call(
        kernel,
        out_shape=jax.ShapeDtypeStruct((N, H), hidden_states.dtype),
        grid=grid,
        in_specs=[
            pl.BlockSpec((tile_n, H), lambda i: (i, 0)),   # x: row tiles
            pl.BlockSpec((H, H), lambda i: (0, 0)),        # W^T: VMEM-resident
            pl.BlockSpec((3, H), lambda i: (0, 0)),        # bias/gamma/beta slab
        ],
        out_specs=pl.BlockSpec((tile_n, H), lambda i: (i, 0)),
        compiler_params=pltpu.CompilerParams(
            dimension_semantics=("parallel",),
            vmem_limit_bytes=vmem_limit,
        ),
        cost_estimate=cost,
    )(x2d, w_t, vecs)

    return out2d.reshape(orig_shape)


# ------------------------------ reference -----------------------------------

def reference(hidden_states, params, *, act="gelu", ln_eps=1e-5):
    """Pure-JAX mirror of the torch forward (f32, exact erf GELU)."""
    x = hidden_states.astype(jnp.float32)
    w = params["dense_w"].astype(jnp.float32)
    y = x @ w.T + params["dense_b"].astype(jnp.float32)
    y = _apply_act(y, act, gelu_approx=False)
    u = jnp.mean(y, axis=-1, keepdims=True)
    s = jnp.mean((y - u) ** 2, axis=-1, keepdims=True)
    hn = (y - u) / jnp.sqrt(s + ln_eps)
    out = params["ln_gamma"] * hn + params["ln_beta"]
    return out.astype(hidden_states.dtype)


# -------------------------------- test ---------------------------------------

if __name__ == "__main__":
    key = jax.random.PRNGKey(0)
    k1, k2, k3 = jax.random.split(key, 3)

    B, S, H = 2, 8, 128
    hidden_states = jax.random.normal(k1, (B, S, H), dtype=jnp.float32)

    bound = 1.0 / math.sqrt(H)
    params = {
        "dense_w": jax.random.uniform(k2, (H, H), jnp.float32, -bound, bound),
        "dense_b": jax.random.uniform(k3, (H,), jnp.float32, -bound, bound),
        "ln_gamma": jnp.ones((H,), jnp.float32),   # BertLayerNorm weight
        "ln_beta": jnp.zeros((H,), jnp.float32),   # BertLayerNorm bias
    }

    # Parameter prep is done ONCE (not per call).
    prepared_exact = prepare_params(params, mxu_dtype=jnp.float32)
    prepared_fast = prepare_params(params, mxu_dtype=jnp.bfloat16)

    ref = reference(hidden_states, params)

    # 1) Exact path: f32 MXU operands, erf GELU -> tight tolerance.
    out = bert_prediction_head_transform(hidden_states, prepared_exact)
    out = jax.block_until_ready(out)
    assert out.shape == (B, S, H)
    assert jnp.allclose(out, ref, atol=2e-4, rtol=2e-4), float(
        jnp.max(jnp.abs(out - ref)))

    # 2) Partial last block path (N=18 -> tile_n=16, grid=2 with a masked tail),
    #    no wrapper-side padding copy.
    hs2 = jax.random.normal(jax.random.PRNGKey(1), (2, 9, H), dtype=jnp.float32)
    out2 = bert_prediction_head_transform(hs2, prepared_exact)
    out2 = jax.block_until_ready(out2)
    ref2 = reference(hs2, params)
    assert out2.shape == hs2.shape
    assert jnp.allclose(out2, ref2, atol=2e-4, rtol=2e-4), float(
        jnp.max(jnp.abs(out2 - ref2)))

    # 3) Fast path: bf16 MXU operands + tanh-approx GELU (the v6e/v7x
    #    epilogue-bound configuration) -> loose tolerance vs the f32 reference.
    out3 = bert_prediction_head_transform(hidden_states, prepared_fast,
                                          gelu_approx=True)
    out3 = jax.block_until_ready(out3)
    assert jnp.allclose(out3, ref, atol=5e-2, rtol=5e-2), float(
        jnp.max(jnp.abs(out3 - ref)))

    print("KERNEL_OK")
</pallas_src>

<mosaic_0001>
module attributes {stable_mosaic.version = 11 : i64} {
  func.func @kernel(%arg0: i32, %arg1: memref<8x128xf32, #tpu.memory_space<vmem>>, %arg2: memref<128x128xf32, #tpu.memory_space<vmem>>, %arg3: memref<3x128xf32, #tpu.memory_space<vmem>>, %arg4: memref<8x128xf32, #tpu.memory_space<vmem>>) attributes {dimension_semantics = [#tpu.dimension_semantics<parallel>], iteration_bounds = array<i64: 2>, scalar_prefetch = 0 : i64, scratch_operands = 0 : i64, tpu.core_type = #tpu.core_type<tc>, window_params = [{transform_indices = @transform_0, window_bounds = array<i64: 8, 128>}, {pipeline_mode = #tpu.pipeline_mode<synchronous>, transform_indices = @transform_1, window_bounds = array<i64: 128, 128>}, {pipeline_mode = #tpu.pipeline_mode<synchronous>, transform_indices = @transform_2, window_bounds = array<i64: 3, 128>}, {transform_indices = @transform_3, window_bounds = array<i64: 8, 128>}]} {
    %c0 = arith.constant 0 : index
    %c0_0 = arith.constant 0 : index
    %0 = vector.load %arg1[%c0, %c0_0] : memref<8x128xf32, #tpu.memory_space<vmem>>, vector<8x128xf32>
    %c0_1 = arith.constant 0 : index
    %c0_2 = arith.constant 0 : index
    %1 = vector.load %arg2[%c0_1, %c0_2] : memref<128x128xf32, #tpu.memory_space<vmem>>, vector<128x128xf32>
    %cst = arith.constant dense<0.000000e+00> : vector<8x128xf32>
    %2 = tpu.matmul %0, %1, %cst {dimension_numbers = #tpu.dot_dimension_numbers<[1], [0], [0], [1], [0, 0, 1, 1], [], []>} : vector<8x128xf32>, vector<128x128xf32>, vector<8x128xf32> -> vector<8x128xf32>
    %c0_3 = arith.constant 0 : index
    %c0_4 = arith.constant 0 : index
    %3 = vector.load %arg3[%c0_3, %c0_4] : memref<3x128xf32, #tpu.memory_space<vmem>>, vector<1x128xf32>
    %c1 = arith.constant 1 : index
    %c0_5 = arith.constant 0 : index
    %4 = vector.load %arg3[%c1, %c0_5] : memref<3x128xf32, #tpu.memory_space<vmem>>, vector<1x128xf32>
    %c2 = arith.constant 2 : index
    %c0_6 = arith.constant 0 : index
    %5 = vector.load %arg3[%c2, %c0_6] : memref<3x128xf32, #tpu.memory_space<vmem>>, vector<1x128xf32>
    %6 = vector.broadcast %3 : vector<1x128xf32> to vector<8x128xf32>
    %7 = arith.addf %2, %6 : vector<8x128xf32>
    %cst_7 = arith.constant 5.000000e-01 : f32
    %8 = vector.broadcast %cst_7 : f32 to vector<8x128xf32>
    %9 = arith.mulf %8, %7 : vector<8x128xf32>
    %cst_8 = arith.constant 0.707106769 : f32
    %10 = vector.broadcast %cst_8 : f32 to vector<8x128xf32>
    %11 = arith.mulf %7, %10 : vector<8x128xf32>
    %12 = math.erf %11 : vector<8x128xf32>
    %cst_9 = arith.constant 1.000000e+00 : f32
    %13 = vector.broadcast %cst_9 : f32 to vector<8x128xf32>
    %14 = arith.addf %13, %12 : vector<8x128xf32>
    %15 = arith.mulf %9, %14 : vector<8x128xf32>
    %cst_10 = arith.constant dense<0.000000e+00> : vector<8xf32>
    %16 = vector.multi_reduction <add>, %15, %cst_10 [1] : vector<8x128xf32> to vector<8xf32>
    %17 = vector.shape_cast %16 : vector<8xf32> to vector<8x1xf32>
    %cst_11 = arith.constant 1.280000e+02 : f32
    %18 = vector.broadcast %cst_11 : f32 to vector<8x1xf32>
    %19 = arith.divf %17, %18 : vector<8x1xf32>
    %20 = arith.mulf %15, %15 : vector<8x128xf32>
    %cst_12 = arith.constant dense<0.000000e+00> : vector<8xf32>
    %21 = vector.multi_reduction <add>, %20, %cst_12 [1] : vector<8x128xf32> to vector<8xf32>
    %22 = vector.shape_cast %21 : vector<8xf32> to vector<8x1xf32>
    %cst_13 = arith.constant 1.280000e+02 : f32
    %23 = vector.broadcast %cst_13 : f32 to vector<8x1xf32>
    %24 = arith.divf %22, %23 : vector<8x1xf32>
    %25 = arith.mulf %19, %19 : vector<8x1xf32>
    %26 = arith.subf %24, %25 : vector<8x1xf32>
    %cst_14 = arith.constant 0.000000e+00 : f32
    %27 = vector.broadcast %cst_14 : f32 to vector<8x1xf32>
    %28 = arith.maximumf %26, %27 : vector<8x1xf32>
    %cst_15 = arith.constant 9.99999974E-6 : f32
    %29 = vector.broadcast %cst_15 : f32 to vector<8x1xf32>
    %30 = arith.addf %28, %29 : vector<8x1xf32>
    %31 = math.rsqrt %30 : vector<8x1xf32>
    %32 = vector.broadcast %19 : vector<8x1xf32> to vector<8x128xf32>
    %33 = arith.subf %15, %32 : vector<8x128xf32>
    %34 = vector.broadcast %31 : vector<8x1xf32> to vector<8x128xf32>
    %35 = vector.broadcast %4 : vector<1x128xf32> to vector<8x128xf32>
    %36 = arith.mulf %34, %35 : vector<8x128xf32>
    %37 = arith.mulf %33, %36 : vector<8x128xf32>
    %38 = vector.broadcast %5 : vector<1x128xf32> to vector<8x128xf32>
    %39 = arith.addf %37, %38 : vector<8x128xf32>
    %c0_16 = arith.constant 0 : index
    %c0_17 = arith.constant 0 : index
    %40 = vector.load %arg4[%c0_16, %c0_17] : memref<8x128xf32, #tpu.memory_space<vmem>>, vector<8x128xf32>
    tpu.vector_store %arg4[%c0_16, %c0_17], %39 {strides = array<i32>} : memref<8x128xf32, #tpu.memory_space<vmem>>, vector<8x128xf32>,
    return
  }
  func.func @transform_0(%arg0: i32) -> (i32, i32) {
    %c0_i32 = arith.constant 0 : i32
    %c0_i32_0 = arith.constant 0 : i32
    return %arg0, %c0_i32 : i32, i32
  }
  func.func @transform_1(%arg0: i32) -> (i32, i32) {
    %c0_i32 = arith.constant 0 : i32
    %c0_i32_0 = arith.constant 0 : i32
    %c0_i32_1 = arith.constant 0 : i32
    return %c0_i32, %c0_i32_0 : i32, i32
  }
  func.func @transform_2(%arg0: i32) -> (i32, i32) {
    %c0_i32 = arith.constant 0 : i32
    %c0_i32_0 = arith.constant 0 : i32
    %c0_i32_1 = arith.constant 0 : i32
    return %c0_i32, %c0_i32_0 : i32, i32
  }
  func.func @transform_3(%arg0: i32) -> (i32, i32) {
    %c0_i32 = arith.constant 0 : i32
    %c0_i32_0 = arith.constant 0 : i32
    return %arg0, %c0_i32 : i32, i32
  }
}

</mosaic_0001>

<bundles_post_ra>
// kernel: tpu_custom_call.1
= control target key start
LH: loop header
LB: loop body
LE: loop exit
PB: predicated region body
PF: predicated region fallthrough
CT: control target
= control target key end

     0   :  { %8 = vsyncpa [#allocation3], 0  ;;  %s949_s0 = inlined_call_operand.hbm [shape: f32[16,128], index: 0, kind: input, shape index: {}]   ;;  %s950_s1 = inlined_call_operand.hbm [shape: f32[128,128], index: 1, kind: input, shape index: {}]   ;;  %s951_s2 = inlined_call_operand.vmem [shape: f32[3,128], index: 2, kind: input, shape index: {}]   ;;  %s952_s3 = inlined_call_operand.hbm [shape: f32[16,128], index: 3, kind: output, shape index: {}]  }
   0x1   :  { %10 = vsyncpa [#allocation3 + $0x1], 0 }
   0x2   :  { %11 = vsyncpa [#allocation6], 0 }
   0x3   :  { %12 = vsyncpa [#allocation4], 0 }
   0x4   :  { %14 = vsyncpa [#allocation4 + $0x1], 0  ;;  %s737_s12 = smov 0   ;;  %s739_s13 = smov 0  }
   0x5   :  { %s741_s14 = smov 0   ;;  %s743_s15 = smov 0  }
   0x6 LB: > { %s758_s16 = sadd.s32 4294967295, %s707_s15   ;;  %s420_s17 = sadd.s32 4294967294, %s707_s15   ;;  %s707_s15 = sphi %s743_s15, %s972_s15   ;;  %s703_s14 = sphi %s741_s14, %s971_s14   ;;  %s699_s13 = sphi %s739_s13, %s970_s13   ;;  %s695_s12 = sphi %s737_s12, %s969_s12  }
   0x7   : > { %p40_p0 = scmp.ne.s32.totalorder %s699_s13, %s695_s12  ;;  %p953_p1 = scmp.eq.s32.totalorder %s758_s16, 0 }
   0x8   : > { %p112_p3 = scmp.eq.s32.totalorder %s420_s17, 1  ;;  %p421_p5 = scmp.ge.s32.totalorder %s707_s15, 1 }
   0x9   : > { %p767_p4 = por %p953_p1, %p40_p0  ;;  %p119_p7 = scmp.lt.s32.totalorder %s707_s15, 3 }
   0xa   : > { %p772_p6 = por %p112_p3, %p40_p0  ;;  %s709_s21 = smov [#allocation5]  }
   0xb   : > { %s956_s18 = scalar_select %p767_p4, 1, 0 }
   0xc   : > { %s957_s19 = scalar_select %p772_p6, 1, 0 }
   0xd   : > { %p777_p8 = pnand %p421_p5, %p119_p7  ;;  %s131_s22 = sshll.u32 %s709_s21, 4  ;;  %s781_s22 = int_to_ptr.vmem [resolvable:$true] %s131_s22 }
   0xe   : > { %s793_s24 = sadd.s32 1, %s707_s15   ;;  %s27_s25 = sadd.s32 1, %s703_s14 }
   0xf   : > { %s958_s20 = scalar_select %p777_p8, 1, 0 }
  0x10   : > { %p521_p9 = pneg %p777_p8  ;;  %s24_s26 = ssub.s32 %s707_s15, %s793_s24 }
  0x11   : > { %s579_s29 = scalar_lea.hbm %s950_s1, 2048 }
  0x12   : > { %p788_p11 = pnand %p521_p9, %p953_p1  ;;  %p580_p12 = scmp.ne.s32.totalorder %s950_s1, %s579_s29 }
  0x13   : > { %p586_p5 = scmp.lt.u32.totalorder %s579_s29, %s950_s1 }
  0x14   : > { %p581_p13 = pneg %p788_p11 }
  0x16   : > { %p582_p0 = pnand %p581_p13, %p580_p12 }
  0x18   : > { %p583_p3 = pneg %p582_p0 }
  0x1a   : > { %p588_p7 = pnand %p586_p5, %p583_p3 }
  0x1c   : > { %591 = shalt.err (!%p588_p7)
}
  0x1d   : > { %s592_s7 = scalar_lea.vmem %s781_s22, 2048  ;;  %p600_p2 = scmp.lt.s32.totalorder %s781_s22, %s781_s22 }
  0x1e   : > { %p593_p9 = scmp.ne.s32.totalorder %s781_s22, %s592_s7  ;;  %p601_p6 = scmp.lt.s32.totalorder %s592_s7, %s592_s7 }
  0x20   : > { %p595_p10 = pnand %p593_p9, %p581_p13  ;;  %p602_p4 = por %p601_p6, %p600_p2 }
  0x22   : > { %p596_p1 = pneg %p595_p10 }
  0x24   : > { %p603_p8 = pnand %p602_p4, %p596_p1 }
  0x26   : > { %606 = shalt.err (!%p603_p8)
}
  0x27   : > { %s710_s8 = smov 128   ;;  %s711_s9 = smov 8  }
  0x28   : > { %524 = dma.hbm_to_vmem [thread:$0]  (!%p788_p11), %s950_s1, 2048, %s781_s22, [#allocation6], %s710_s8, %s710_s8, %s711_s9  }
  0x29   : > { %p25_p2 = scmp.eq.s32.totalorder %s24_s26, 0  ;;  %p34_p1 = scmp.ne.s32.totalorder %s703_s14, %s699_s13 }
  0x2a   : > { %p35_p4 = scmp.eq.s32.totalorder %s707_s15, 0  ;;  %p534_p6 = scmp.lt.s32.totalorder %s707_s15, 2 }
  0x2b   : > { %s824_s17 = scalar_select %p25_p2, %s703_s14, %s27_s25  }
  0x2c   : > { %p36_p8 = por %p35_p4, %p34_p1  ;;  %p960_p10 = scmp.eq.s32.totalorder %s758_s16, 1 }
  0x2d   : > { %s148_s27 = sand.u32 1, %s703_s14   ;;  %s425_s28 = sshll.u32 %s707_s15, 7 }
  0x2e   : > { %p828_p12 = por %p960_p10, %p34_p1  ;;  %s424_s29 = sshll.u32 %s148_s27, 3 }
  0x2f   : > { %s837_s4 = scalar_lea.hbm %s949_s0, %s425_s28  ;;  %s152_s22 = scalar_lea.vmem [#allocation2], %s424_s29 }
  0x30   : > { %s159_s25 = sshll.u32 %s152_s22, 4  ;;  %p839_p11 = pnand %p534_p6, %p36_p8  ;;  %s843_s25 = int_to_ptr.vmem [resolvable:$true] %s159_s25 }
  0x31   : > { %s149_s5 = scalar_lea.sflag [#allocation3], %s148_s27  ;;  %s607_s6 = scalar_lea.hbm %s837_s4, 128 }
  0x32   : > { %p608_p13 = scmp.ne.s32.totalorder %s837_s4, %s607_s6  ;;  %p609_p0 = pneg %p839_p11 }
  0x33   : > { %s612_s9 = scalar_lea.hbm %s949_s0, 256  ;;  %p613_p7 = scmp.lt.u32.totalorder %s837_s4, %s949_s0 }
  0x34   : > { %p610_p3 = pnand %p609_p0, %p608_p13  ;;  %p614_p9 = scmp.lt.u32.totalorder %s612_s9, %s607_s6 }
  0x35   : > { %p616_p1 = scmp.lt.u32.totalorder %s607_s6, %s837_s4 }
  0x36   : > { %p611_p5 = pneg %p610_p3  ;;  %p615_p2 = por %p614_p9, %p613_p7 }
  0x38   : > { %p617_p4 = por %p616_p1, %p615_p2 }
  0x3a   : > { %p618_p6 = pnand %p617_p4, %p611_p5 }
  0x3c   : > { %621 = shalt.err (!%p618_p6)
}
  0x3d   : > { %s622_s27 = scalar_lea.vmem %s843_s25, 128  ;;  %s712_s28 = smov [#allocation2]  }
  0x3e   : > { %p623_p8 = scmp.ne.s32.totalorder %s843_s25, %s622_s27  ;;  %s627_s29 = sshll.u32 %s712_s28, 4  ;;  %s628_s29 = int_to_ptr.vmem [resolvable:$false] %s627_s29 }
  0x3f   : > { %s629_s23 = scalar_lea.vmem %s628_s29, 256  ;;  %p630_p3 = scmp.lt.s32.totalorder %s843_s25, %s628_s29 }
  0x40   : > { %p625_p10 = pnand %p623_p8, %p609_p0  ;;  %p631_p7 = scmp.lt.s32.totalorder %s629_s23, %s622_s27 }
  0x42   : > { %p626_p13 = pneg %p625_p10  ;;  %p632_p9 = por %p631_p7, %p630_p3 }
  0x44   : > { %p633_p2 = pnand %p632_p9, %p626_p13 }
  0x46   : > { %636 = shalt.err (!%p633_p2)
}
  0x47   : > { %528 = dma.hbm_to_vmem [thread:$0]  (!%p839_p11), %s837_s4, 128, %s843_s25, %s149_s5  }
  0x48   : > { %p963_p5 = scmp.ne.s32.totalorder %s958_s20, 0 }
  0x49   : > { %s873_s30 = sand.u32 (!%p963_p5), 1, %s699_s13   ;;  %p964_p0 = scmp.ne.s32.totalorder (!%p963_p5), %s956_s18, 0 }
  0x4a   : > { %168 = sbr.rel (%p963_p5) target bundleno = 535 (0x217), region = 32  ;;  %s427_s22 = sshll.u32 (!%p963_p5), %s873_s30, 3 }
  0x4b   : > { %s171_s6 = scalar_lea.sflag (!%p963_p5), [#allocation3], %s873_s30  ;;  %s879_s7 = scalar_lea.vmem (!%p963_p5), [#allocation2], %s427_s22 }
  0x51   : > { %682 = dma.done.wait (%p964_p0), %s171_s6, 128  }
  0x52   : > { %684 = vsyncadd (%p964_p0), %s171_s6, 4294967168  ;;  %p965_p11 = scmp.eq.s32.totalorder %s758_s16, 0 }
  0x54   : > { %686 = dma.done.wait (%p965_p11), [#allocation6], 2048   ;;  %p966_p1 = pmov %p965_p11 }
  0x55   : > { %v713_v0 = vmov 0.0|0.0   ;;  %vm714_vm0 = vmmov 0   ;;  %v715_v1 = vmov 0.0   ;;  %v202_v2 = vld [vmem:[#allocation5] sm:$0xff]  ;;  %v203_v3 = vld [vmem:[#allocation5 + $0x8] sm:$0xff]  ;;  %v204_v4 = vld [vmem:[#allocation5 + $0x10] sm:$0xff] }
  0x56   : > { %688 = vsyncadd (%p966_p1), [#allocation6], 4294965248  ;;  %489 = vmatprep.subr.bf16.mxu0 %v713_v0  ;;  %486 = vmatprep.mubr.msk.f32.mxu0 %vm714_vm0, %v715_v1  ;;  %v490_v5 = vpack.c.bf16 %v203_v3, %v202_v2  ;;  %v205_v6 = vld [vmem:[#allocation5 + $0x18] sm:$0xff]  ;;  %v206_v8 = vld [vmem:[#allocation5 + $0x20] sm:$0xff]  ;;  %s434_s8 = sshll.u32 %s758_s16, 7  ;;  %s200_s9 = scalar_lea.vmem [#allocation7], %s427_s22 }
  0x57   : > { %v493_v7 = vpack.c.bf16 %v205_v6, %v204_v4  ;;  %v207_v9 = vld [vmem:[#allocation5 + $0x28] sm:$0xff]  ;;  %v208_v11 = vld [vmem:[#allocation5 + $0x30] sm:$0xff]  ;;  %v209_v12 = vld [vmem:[#allocation5 + $0x38] sm:$0xff]  ;;  %s340_s10 = sshll.u32 %s200_s9, 4  ;;  %s905_s28 = scalar_lea.hbm %s952_s3, %s434_s8  ;;  %s907_s10 = int_to_ptr.vmem [resolvable:$true] %s340_s10 }
  0x58   : > { %491 = vmatpush3.bf16.msra.mxu0 %v490_v5  ;;  %v496_v10 = vpack.c.bf16 %v207_v9, %v206_v8  ;;  %v499_v13 = vpack.c.bf16 %v209_v12, %v208_v11  ;;  %v210_v14 = vld [vmem:[#allocation5 + $0x40] sm:$0xff]  ;;  %v211_v15 = vld [vmem:[#allocation5 + $0x48] sm:$0xff]  ;;  %v212_v17 = vld [vmem:[#allocation5 + $0x50] sm:$0xff]  ;;  %s327_s29 = scalar_lea.sflag [#allocation4], %s873_s30  ;;  %s637_s23 = scalar_lea.vmem %s907_s10, 128 }
  0x59   : > { %492 = vmatprep.subr.bf16.mxu0 %v713_v0  ;;  %v502_v16 = vpack.c.bf16 %v211_v15, %v210_v14  ;;  %v213_v18 = vld [vmem:[#allocation5 + $0x58] sm:$0xff]  ;;  %v214_v20 = vld [vmem:[#allocation5 + $0x60] sm:$0xff]  ;;  %v215_v21 = vld [vmem:[#allocation5 + $0x68] sm:$0xff]  ;;  %p638_p4 = scmp.ne.s32.totalorder %s907_s10, %s637_s23  ;;  %s716_s16 = smov [#allocation7]  }
  0x5a   : > { %v505_v19 = vpack.c.bf16 %v213_v18, %v212_v17  ;;  %v508_v22 = vpack.c.bf16 %v215_v21, %v214_v20  ;;  %v216_v23 = vld [vmem:[#allocation5 + $0x70] sm:$0xff]  ;;  %v217_v24 = vld [vmem:[#allocation5 + $0x78] sm:$0xff]  ;;  %s641_s22 = sshll.u32 %s716_s16, 4  ;;  %s642_s22 = int_to_ptr.vmem [resolvable:$false] %s641_s22 }
  0x5b   : > { %v511_v25 = vpack.c.bf16 %v217_v24, %v216_v23  ;;  %v201_v26 = vld [vmem:[%s879_s7] sm:$0xff]  ;;  %p639_p6 = pnand %p638_p4, %p828_p12  ;;  %s643_s6 = scalar_lea.vmem %s642_s22, 256 }
  0x5c   : > { %494 = vmatpush3.bf16.msra.mxu0 %v493_v7  ;;  %v430_v27 = vld [vmem:[%s951_s2] ss:$0 sm:$0xff]  ;;  %v431_v45 = vld [vmem:[%s951_s2 + $0x1] ss:$0 sm:$0xff]  ;;  %v432_v49 = vld [vmem:[%s951_s2 + $0x2] ss:$0 sm:$0xff]  ;;  %p644_p10 = scmp.lt.s32.totalorder %s907_s10, %s642_s22  ;;  %p645_p13 = scmp.lt.s32.totalorder %s643_s6, %s637_s23 }
  0x5d   : > { %495 = vmatprep.subr.bf16.mxu0 %v713_v0  ;;  %p640_p8 = pneg %p639_p6 }
  0x5e   : > { %p646_p3 = por %p645_p13, %p644_p10 }
  0x60   : > { %497 = vmatpush3.bf16.msra.mxu0 %v496_v10  ;;  %p647_p7 = pnand %p646_p3, %p640_p8 }
  0x61   : > { %498 = vmatprep.subr.bf16.mxu0 %v713_v0 }
  0x64   : > { %500 = vmatpush3.bf16.msra.mxu0 %v499_v13 }
  0x65   : > { %501 = vmatprep.subr.bf16.mxu0 %v713_v0 }
  0x68   : > { %503 = vmatpush3.bf16.msra.mxu0 %v502_v16 }
  0x69   : > { %504 = vmatprep.subr.bf16.mxu0 %v713_v0 }
  0x6c   : > { %506 = vmatpush3.bf16.msra.mxu0 %v505_v19 }
  0x6d   : > { %507 = vmatprep.subr.bf16.mxu0 %v713_v0 }
  0x70   : > { %509 = vmatpush3.bf16.msra.mxu0 %v508_v22 }
  0x71   : > { %510 = vmatprep.subr.bf16.mxu0 %v713_v0 }
  0x74   : > { %512 = vmatpush3.bf16.msra.mxu0 %v511_v25 }
  0x77   : > { %487 = vmatmul.mubr.f32.vlgmr.msra.gmra.mrb[0].mxu0 %v201_v26 }
 0x14a   : > { %v291_v28 = vpop.f32.mrb[0].mxu0 }
 0x14b   : > { %v292_v29 = vadd.f32 %v430_v27, %v291_v28  ;;  %v488_v30 = vpop.f32.mrb[1].mxu0 }
 0x14d   : > { %v296_v31 = vmul.f32 0.70710677, %v292_v29  ;;  %v295_v33 = vmul.f32 0.5, %v292_v29 }
 0x14f   : > { %575 = verf.f32 %v296_v31 }
 0x159   : > { %v576_v32 = vpop.eup %575 }
 0x15a   : > { %v298_v34 = vadd.f32 1.0, %v576_v32 }
 0x15c   : > { %v299_v35 = vmul.f32 %v298_v34, %v295_v33 }
 0x15e   : > { %300 = vadd.xlane.f32.xlu0 %v299_v35  ;;  %v304_v36 = vmul.f32 %v299_v35, %v299_v35 }
 0x162   : > { %305 = vadd.xlane.f32.xlu0 %v304_v36 }
 0x1eb   : > { %v301_v37 = vpop.xlane.xlu0 %300 }
 0x1ec   : > { %v303_v38 = vmul.f32 0.0078125, %v301_v37 }
 0x1ee   : > { %v308_v40 = vmul.f32 %v303_v38, %v303_v38  ;;  %v313_v47 = vsub.f32 %v299_v35, %v303_v38 }
 0x1ef   : > { %v306_v39 = vpop.xlane.xlu0 %305 }
 0x1f0   : > { %v307_v41 = vmul.f32 0.0078125, %v306_v39 }
 0x1f2   : > { %v309_v42 = vsub.f32 %v307_v41, %v308_v40 }
 0x1f4   : > { %v310_v43 = vmax.f32 %v309_v42, 0.0 }
 0x1f6   : > { %v311_v44 = vadd.f32 1e-05, %v310_v43 }
 0x1f8   : > { %577 = vrsqrt.f32 %v311_v44 }
 0x202   : > { %v578_v46 = vpop.eup %577 }
 0x203   : > { %v318_v48 = vmul.f32 %v578_v46, %v431_v45 }
 0x205   : > { %v319_v50 = vmul.f32 %v318_v48, %v313_v47 }
 0x207   : > { %v324_v51 = vadd.f32 %v432_v49, %v319_v50 }
 0x209   : > { %325 = vst [vmem:[%s200_s9] sm:$0xff] %v324_v51 }
 0x20a   : > { %650 = shalt.err (!%p647_p7)
}
 0x20b   : > { %s651_s30 = scalar_lea.hbm %s905_s28, 128  ;;  %s655_s20 = scalar_lea.hbm %s952_s3, 256 }
 0x20c   : > { %p652_p9 = scmp.ne.s32.totalorder %s905_s28, %s651_s30  ;;  %p656_p0 = scmp.lt.u32.totalorder %s905_s28, %s952_s3 }
 0x20d   : > { %p657_p11 = scmp.lt.u32.totalorder %s655_s20, %s651_s30  ;;  %p659_p4 = scmp.lt.u32.totalorder %s651_s30, %s905_s28 }
 0x20e   : > { %p653_p2 = pnand %p652_p9, %p828_p12 }
 0x20f   : > { %p658_p1 = por %p657_p11, %p656_p0 }
 0x210   : > { %p654_p5 = pneg %p653_p2 }
 0x211   : > { %p660_p6 = por %p659_p4, %p658_p1 }
 0x213   : > { %p661_p8 = pnand %p660_p6, %p654_p5 }
 0x215   : > { %664 = shalt.err (!%p661_p8)
}
 0x216   : > { %519 = dma.vmem_to_hbm [thread:$0]  (%p828_p12), %s907_s10, 128, %s905_s28, %s327_s29  }
 0x217 PF: > { %s352_s26 = sand.u32 1, %s695_s12   ;;  %p967_p10 = scmp.ne.s32.totalorder %s957_s19, 0 }
 0x218   : > { %p968_p13 = scmp.ge.s32.totalorder %s707_s15, 2  ;;  %s353_s5 = scalar_lea.sflag [#allocation4], %s352_s26 }
 0x21a   : > { %p530_p3 = pnand %p968_p13, %p967_p10 }
 0x21c   : > { %690 = dma.done.wait (!%p530_p3), %s353_s5, 128  }
 0x21d   : > { %692 = vsyncadd (!%p530_p3), %s353_s5, 4294967168  ;;  %p17_p7 = scmp.ge.s32.totalorder %s793_s24, 4   ;;  %s969_s12 = smov %s699_s13 }
 0x21e   : > { %s970_s13 = smov %s703_s14  ;;  %s971_s14 = smov %s824_s17 }
 0x21f   : > { %s972_s15 = smov %s793_s24  ;;  %19 = sbr.rel (!%p17_p7) target bundleno = 6 (0x6), region = 81 }
 0x226   :  { %358 = vsyncpa [#allocation3], 1 }
 0x227   :  { %360 = vsyncpa [#allocation3 + $0x1], 1 }
 0x228   :  { %361 = vsyncpa [#allocation6], 1 }
 0x229   :  { %362 = vsyncpa [#allocation4], 1 }
 0x22a   :  { %364 = vsyncpa [#allocation4 + $0x1], 1 }

</bundles_post_ra>
